<compile_context>
chip_gen: v7x
topology: tpu7x:2x2x1
jax: 0.10.0
libtpu: 0.0.40
codegen_flags: <defaults>
</compile_context>

<pallas_src>
import numpy as np
import jax
import jax.numpy as jnp
from jax.experimental import pallas as pl
from jax.experimental.pallas import tpu as pltpu

EPSILON = 1e-10


# --------------------------------------------------------------------------- #
# Kernel
# --------------------------------------------------------------------------- #
def discriminator_kernel(x_ref, cnt_ref, hidden_ref, w_ref, b_ref, out_ref, acc_ref):
    """Masked mean-pool over the sequence (streamed in S tiles) + linear head.

    x_ref      : (tb, ts)     int32  token ids (0 == pad)
    cnt_ref    : (tb, 1)      f32    per-row non-pad token counts (precomputed)
    hidden_ref : (tb, ts, H)  bf16   encoder hidden-state tile (streamed)
    w_ref      : (H, C_pad)   f32    head weight (VMEM-resident)
    b_ref      : (1, C_pad)   f32    head bias   (VMEM-resident)
    out_ref    : (tb, C_pad)  f32    logits (written only on the last S tile)
    acc_ref    : (tb, H)      f32    masked-sum accumulator (VMEM scratch)
    """
    si = pl.program_id(1)

    @pl.when(si == 0)
    def _init():
        acc_ref[...] = jnp.zeros_like(acc_ref)

    # One batched contraction over the whole tile (no per-row Python loop, no
    # 1-row masked accumulator stores): (tb,1,ts) @ (tb,ts,H) -> (tb,1,H).
    mask = (x_ref[...] != 0).astype(hidden_ref.dtype)               # (tb, ts) exact 0/1
    partial = jnp.einsum("bqs,bsh->bqh", mask[:, None, :], hidden_ref[...],
                         preferred_element_type=jnp.float32)         # (tb, 1, H) f32
    acc_ref[...] += partial[:, 0, :]                                  # full-tile accumulate

    @pl.when(si == pl.num_programs(1) - 1)
    def _finalize():
        avg = acc_ref[...] / (cnt_ref[...] + EPSILON)                 # (tb, H) f32
        logits = jnp.dot(avg, w_ref[...], preferred_element_type=jnp.float32)
        out_ref[...] = (logits + b_ref[...]).astype(out_ref.dtype)


# --------------------------------------------------------------------------- #
# Tile / VMEM policy
# --------------------------------------------------------------------------- #
def _vmem_limit_bytes():
    """Generation-aware scoped-VMEM cap: ~32 MiB on 64-MiB-VMEM chips (v7x-class),
    64 MiB on 128-MiB-VMEM chips (v5e / v6e)."""
    phys = 128 * 1024 * 1024
    try:
        phys = int(getattr(pltpu.get_tpu_info(), "vmem_capacity_bytes", phys))
    except Exception:
        pass
    return 32 * 1024 * 1024 if phys <= 64 * 1024 * 1024 else 64 * 1024 * 1024


def _select_tiles(B, S, H, C_pad, hidden_itemsize, vmem_limit):
    """Pick (tb, ts) from a byte budget (hidden double-buffered, weights resident);
    prefer >= 2 batch tiles so the parallel axis can shard across 2 TCs (v7x)."""

    def vmem_bytes(tb, ts):
        hidden = 2 * tb * ts * H * hidden_itemsize        # double-buffered hidden tile
        ids = 2 * tb * max(ts, 128) * 4                   # double-buffered token ids
        cnts = 2 * tb * 128 * 4                           # counts (lane-padded)
        wts = 2 * (H * C_pad + 8 * C_pad) * 4             # head W/b (worst case 2 bufs)
        outb = 2 * tb * C_pad * 4                         # logits block
        acc = tb * H * 4                                  # f32 accumulator scratch
        return hidden + ids + cnts + wts + outb + acc

    tb_cands = [t for t in (64, 32, 16, 8) if t <= B and B % t == 0] or [B]
    ts_cands = [t for t in (4096, 2048, 1024, 512, 256, 128)
                if t <= S and S % t == 0] or [S]

    budget = int(vmem_limit * 0.9)
    best_key, best_tiles = None, (tb_cands[-1], ts_cands[-1])
    for tb in tb_cands:
        for ts in ts_cands:
            if vmem_bytes(tb, ts) > budget:
                continue
            key = (B // tb >= 2, tb * ts, ts)     # (>=2 batch tiles, biggest tile)
            if best_key is None or key > best_key:
                best_key, best_tiles = key, (tb, ts)
    return best_tiles


# --------------------------------------------------------------------------- #
# Wrapper
# --------------------------------------------------------------------------- #
def pad_classifier_head(head_w, head_b):
    """Pad the ClassificationHead to a lane-dense 128-multiple class dim, once,
    outside the hot path (zero columns do not change the real logits)."""
    H, C = head_w.shape
    C_pad = max(128, pl.cdiv(C, 128) * 128)
    w_pad = jnp.zeros((H, C_pad), jnp.float32).at[:, :C].set(head_w.astype(jnp.float32))
    b_pad = jnp.zeros((1, C_pad), jnp.float32).at[:, :C].set(
        head_b.astype(jnp.float32)[None, :])
    return w_pad, b_pad, C


def discriminator_forward(x_ids, hidden, w_pad, b_pad, num_classes, *,
                          batch_tile=None, seq_tile=None):
    """x_ids: (B,S) int32; hidden: (B,S,H) bf16/f32 last hidden states;
    w_pad/b_pad: padded head params from pad_classifier_head."""
    B, S = x_ids.shape
    H = hidden.shape[-1]
    C_pad = w_pad.shape[-1]

    vmem_limit = _vmem_limit_bytes()
    tb_auto, ts_auto = _select_tiles(B, S, H, C_pad,
                                     jnp.dtype(hidden.dtype).itemsize, vmem_limit)
    tb = batch_tile if batch_tile is not None else tb_auto
    ts = seq_tile if seq_tile is not None else ts_auto
    assert B % tb == 0 and S % ts == 0, "tile sizes must divide (B, S)"

    # Non-pad token counts, hoisted out of the kernel (trivial XLA reduce).
    cnt = jnp.sum((x_ids != 0).astype(jnp.float32), axis=1, keepdims=True)   # (B, 1)

    grid = (B // tb, S // ts)

    def run(single_buffer_weights):
        wb_mode = pl.Buffered(1) if single_buffer_weights else None
        return pl.pallas_call(
            discriminator_kernel,
            out_shape=jax.ShapeDtypeStruct((B, C_pad), jnp.float32),
            grid=grid,
            in_specs=[
                pl.BlockSpec((tb, ts), lambda bi, si: (bi, si)),        # token ids
                pl.BlockSpec((tb, 1), lambda bi, si: (bi, 0)),          # token counts
                pl.BlockSpec((tb, ts, H), lambda bi, si: (bi, si, 0)),  # hidden (streamed)
                pl.BlockSpec((H, C_pad), lambda bi, si: (0, 0),         # head W (resident)
                             pipeline_mode=wb_mode),
                pl.BlockSpec((1, C_pad), lambda bi, si: (0, 0),         # head b (resident)
                             pipeline_mode=wb_mode),
            ],
            out_specs=pl.BlockSpec((tb, C_pad), lambda bi, si: (bi, 0)),
            scratch_shapes=[pltpu.VMEM((tb, H), jnp.float32)],          # masked-sum acc
            compiler_params=pltpu.CompilerParams(
                dimension_semantics=("parallel", "arbitrary"),
                vmem_limit_bytes=vmem_limit,
            ),
        )(x_ids, cnt, hidden, w_pad, b_pad)

    try:
        out = jax.block_until_ready(run(True))
    except Exception:
        # TODO(synk): drop this fallback once Buffered(1) single-buffering of the
        # resident head weights is guaranteed by the installed Pallas version.
        out = jax.block_until_ready(run(False))
    return out[:, :num_classes]


# --------------------------------------------------------------------------- #
# Reference + test
# --------------------------------------------------------------------------- #
def reference_forward(x_ids, hidden, head_w, head_b):
    """Plain numpy reference matching the PyTorch module (f32 math on bf16 hidden)."""
    x = np.asarray(x_ids)
    h = np.asarray(hidden.astype(jnp.float32))
    w = np.asarray(head_w, dtype=np.float32)
    b = np.asarray(head_b, dtype=np.float32)
    mask = (x != 0).astype(np.float32)[:, :, None]
    avg = (h * mask).sum(axis=1) / (mask.sum(axis=1) + EPSILON)
    return avg @ w + b[None, :]


if __name__ == "__main__":
    key = jax.random.PRNGKey(0)
    k_tok, k_emb, k_w, k_b = jax.random.split(key, 4)

    # ---- small shapes consistent with the module's forward ----
    B, S, H, C = 2, 8, 32, 4          # batch, seq, embed_size, class_size
    VOCAB = 50

    x_ids = jax.random.randint(k_tok, (B, S), minval=1, maxval=VOCAB, dtype=jnp.int32)
    pad = jnp.arange(S)[None, :] >= jnp.array([[6], [5]])      # trailing padding (id 0)
    x_ids = jnp.where(pad, 0, x_ids)

    # TODO(synk): stand-in encoder — deterministic bf16 embedding lookup produces the
    #             "last hidden states" (the pretrained DialoGPT transformer itself is
    #             not reimplemented).
    emb_table = (jax.random.normal(k_emb, (VOCAB, H), dtype=jnp.float32) * 0.1
                 ).astype(jnp.bfloat16)
    hidden = emb_table[x_ids]                                   # (B, S, H) bf16

    head_w = jax.random.normal(k_w, (H, C), dtype=jnp.float32) * 0.05
    head_b = jax.random.normal(k_b, (C,), dtype=jnp.float32) * 0.01
    w_pad, b_pad, n_cls = pad_classifier_head(head_w, head_b)

    logits = jax.block_until_ready(
        discriminator_forward(x_ids, hidden, w_pad, b_pad, n_cls))
    ref = reference_forward(x_ids, hidden, head_w, head_b)
    assert logits.shape == (B, C)
    assert jnp.allclose(logits, ref, atol=1e-3, rtol=1e-3)

    # ---- multi-tile grid: exercises the accumulate / finalize path ----
    B2, S2, H2, C2 = 16, 256, 128, 4
    k2_tok, k2_emb, k2_w, k2_b = jax.random.split(jax.random.PRNGKey(1), 4)
    x2 = jax.random.randint(k2_tok, (B2, S2), minval=1, maxval=VOCAB, dtype=jnp.int32)
    lens = jax.random.randint(jax.random.PRNGKey(2), (B2, 1), minval=1, maxval=S2)
    x2 = jnp.where(jnp.arange(S2)[None, :] >= lens, 0, x2)
    emb2 = (jax.random.normal(k2_emb, (VOCAB, H2), dtype=jnp.float32) * 0.1
            ).astype(jnp.bfloat16)
    hidden2 = emb2[x2]
    w2 = jax.random.normal(k2_w, (H2, C2), dtype=jnp.float32) * 0.05
    b2 = jax.random.normal(k2_b, (C2,), dtype=jnp.float32) * 0.01
    w2_pad, b2_pad, n_cls2 = pad_classifier_head(w2, b2)

    out2 = jax.block_until_ready(
        discriminator_forward(x2, hidden2, w2_pad, b2_pad, n_cls2,
                              batch_tile=8, seq_tile=128))
    ref2 = reference_forward(x2, hidden2, w2, b2)
    assert out2.shape == (B2, C2)
    assert jnp.allclose(out2, ref2, atol=1e-3, rtol=1e-3)

    print("KERNEL_OK")
</pallas_src>

<mosaic_0001>
module attributes {stable_mosaic.version = 11 : i64} {
  func.func @discriminator_kernel(%arg0: i32, %arg1: i32, %arg2: memref<2x8xi32, #tpu.memory_space<vmem>>, %arg3: memref<2x1xf32, #tpu.memory_space<vmem>>, %arg4: memref<2x8x32xbf16, #tpu.memory_space<vmem>>, %arg5: memref<32x128xf32, #tpu.memory_space<vmem>>, %arg6: memref<1x128xf32, #tpu.memory_space<vmem>>, %arg7: memref<2x128xf32, #tpu.memory_space<vmem>>, %arg8: memref<2x32xf32, #tpu.memory_space<vmem>>) attributes {dimension_semantics = [#tpu.dimension_semantics<parallel>, #tpu.dimension_semantics<arbitrary>], iteration_bounds = array<i64: 1, 1>, scalar_prefetch = 0 : i64, scratch_operands = 1 : i64, tpu.core_type = #tpu.core_type<tc>, window_params = [{transform_indices = @transform_0, window_bounds = array<i64: 2, 8>}, {transform_indices = @transform_1, window_bounds = array<i64: 2, 1>}, {transform_indices = @transform_2, window_bounds = array<i64: 2, 8, 32>}, {pipeline_mode = #tpu.pipeline_mode<synchronous>, transform_indices = @transform_3, window_bounds = array<i64: 32, 128>}, {pipeline_mode = #tpu.pipeline_mode<synchronous>, transform_indices = @transform_4, window_bounds = array<i64: 1, 128>}, {transform_indices = @transform_5, window_bounds = array<i64: 2, 128>}]} {
    %c0_i32 = arith.constant 0 : i32
    %0 = arith.cmpi eq, %arg1, %c0_i32 : i32
    %1 = arith.extui %0 : i1 to i32
    %c0_i32_0 = arith.constant 0 : i32
    %2 = arith.cmpi ne, %1, %c0_i32_0 : i32
    scf.if %2 {
      %cst_12 = arith.constant 0.000000e+00 : f32
      %19 = vector.broadcast %cst_12 : f32 to vector<2x32xf32>
      %c0_13 = arith.constant 0 : index
      %c0_14 = arith.constant 0 : index
      %20 = vector.load %arg8[%c0_13, %c0_14] : memref<2x32xf32, #tpu.memory_space<vmem>>, vector<2x32xf32>
      tpu.vector_store %arg8[%c0_13, %c0_14], %19 {strides = array<i32>} : memref<2x32xf32, #tpu.memory_space<vmem>>, vector<2x32xf32>,
    } else {
    }
    %c0 = arith.constant 0 : index
    %c0_1 = arith.constant 0 : index
    %3 = vector.load %arg2[%c0, %c0_1] : memref<2x8xi32, #tpu.memory_space<vmem>>, vector<2x8xi32>
    %c0_i32_2 = arith.constant 0 : i32
    %4 = vector.broadcast %c0_i32_2 : i32 to vector<2x8xi32>
    %5 = arith.cmpi ne, %3, %4 : vector<2x8xi32>
    %6 = arith.extui %5 : vector<2x8xi1> to vector<2x8xi32>
    %7 = arith.sitofp %6 : vector<2x8xi32> to vector<2x8xf32>
    %8 = arith.truncf %7 : vector<2x8xf32> to vector<2x8xbf16>
    %9 = vector.shape_cast %8 : vector<2x8xbf16> to vector<2x1x8xbf16>
    %c0_3 = arith.constant 0 : index
    %c0_4 = arith.constant 0 : index
    %c0_5 = arith.constant 0 : index
    %10 = vector.load %arg4[%c0_3, %c0_4, %c0_5] : memref<2x8x32xbf16, #tpu.memory_space<vmem>>, vector<2x8x32xbf16>
    "tpu.trace_start"() <{level = 10 : i32, message = "bqs,bsh->bqh"}> : () -> ()
    %cst = arith.constant dense<0.000000e+00> : vector<2x1x32xf32>
    %11 = tpu.matmul %9, %10, %cst {dimension_numbers = #tpu.dot_dimension_numbers<[2], [1], [1], [2], [0, 0, 0, 1, 1, 2], [0], [0]>} : vector<2x1x8xbf16>, vector<2x8x32xbf16>, vector<2x1x32xf32> -> vector<2x1x32xf32>
    "tpu.trace_stop"() : () -> ()
    %c0_6 = arith.constant 0 : index
    %c0_7 = arith.constant 0 : index
    %12 = vector.load %arg8[%c0_6, %c0_7] : memref<2x32xf32, #tpu.memory_space<vmem>>, vector<2x32xf32>
    %13 = vector.shape_cast %11 : vector<2x1x32xf32> to vector<2x32xf32>
    %14 = arith.addf %12, %13 : vector<2x32xf32>
    %c0_8 = arith.constant 0 : index
    %c0_9 = arith.constant 0 : index
    %15 = vector.load %arg8[%c0_8, %c0_9] : memref<2x32xf32, #tpu.memory_space<vmem>>, vector<2x32xf32>
    tpu.vector_store %arg8[%c0_8, %c0_9], %14 {strides = array<i32>} : memref<2x32xf32, #tpu.memory_space<vmem>>, vector<2x32xf32>,
    %c0_i32_10 = arith.constant 0 : i32
    %16 = arith.cmpi eq, %arg1, %c0_i32_10 : i32
    %17 = arith.extui %16 : i1 to i32
    %c0_i32_11 = arith.constant 0 : i32
    %18 = arith.cmpi ne, %17, %c0_i32_11 : i32
    scf.if %18 {
      %c0_12 = arith.constant 0 : index
      %c0_13 = arith.constant 0 : index
      %19 = vector.load %arg8[%c0_12, %c0_13] : memref<2x32xf32, #tpu.memory_space<vmem>>, vector<2x32xf32>
      %c0_14 = arith.constant 0 : index
      %c0_15 = arith.constant 0 : index
      %20 = vector.load %arg3[%c0_14, %c0_15] : memref<2x1xf32, #tpu.memory_space<vmem>>, vector<2x1xf32>
      %cst_16 = arith.constant 1.000000e-10 : f32
      %21 = vector.broadcast %cst_16 : f32 to vector<2x1xf32>
      %22 = arith.addf %20, %21 : vector<2x1xf32>
      %23 = vector.broadcast %22 : vector<2x1xf32> to vector<2x32xf32>
      %24 = arith.divf %19, %23 : vector<2x32xf32>
      %c0_17 = arith.constant 0 : index
      %c0_18 = arith.constant 0 : index
      %25 = vector.load %arg5[%c0_17, %c0_18] : memref<32x128xf32, #tpu.memory_space<vmem>>, vector<32x128xf32>
      %cst_19 = arith.constant dense<0.000000e+00> : vector<2x128xf32>
      %26 = tpu.matmul %24, %25, %cst_19 {dimension_numbers = #tpu.dot_dimension_numbers<[1], [0], [0], [1], [0, 0, 1, 1], [], []>} : vector<2x32xf32>, vector<32x128xf32>, vector<2x128xf32> -> vector<2x128xf32>
      %c0_20 = arith.constant 0 : index
      %c0_21 = arith.constant 0 : index
      %27 = vector.load %arg6[%c0_20, %c0_21] : memref<1x128xf32, #tpu.memory_space<vmem>>, vector<1x128xf32>
      %28 = vector.broadcast %27 : vector<1x128xf32> to vector<2x128xf32>
      %29 = arith.addf %26, %28 : vector<2x128xf32>
      %c0_22 = arith.constant 0 : index
      %c0_23 = arith.constant 0 : index
      %30 = vector.load %arg7[%c0_22, %c0_23] : memref<2x128xf32, #tpu.memory_space<vmem>>, vector<2x128xf32>
      tpu.vector_store %arg7[%c0_22, %c0_23], %29 {strides = array<i32>} : memref<2x128xf32, #tpu.memory_space<vmem>>, vector<2x128xf32>,
    } else {
    }
    return
  }
  func.func @transform_0(%arg0: i32, %arg1: i32) -> (i32, i32) {
    %c0_i32 = arith.constant 0 : i32
    return %arg0, %arg1 : i32, i32
  }
  func.func @transform_1(%arg0: i32, %arg1: i32) -> (i32, i32) {
    %c0_i32 = arith.constant 0 : i32
    %c0_i32_0 = arith.constant 0 : i32
    return %arg0, %c0_i32 : i32, i32
  }
  func.func @transform_2(%arg0: i32, %arg1: i32) -> (i32, i32, i32) {
    %c0_i32 = arith.constant 0 : i32
    %c0_i32_0 = arith.constant 0 : i32
    return %arg0, %arg1, %c0_i32 : i32, i32, i32
  }
  func.func @transform_3(%arg0: i32, %arg1: i32) -> (i32, i32) {
    %c0_i32 = arith.constant 0 : i32
    %c0_i32_0 = arith.constant 0 : i32
    %c0_i32_1 = arith.constant 0 : i32
    return %c0_i32, %c0_i32_0 : i32, i32
  }
  func.func @transform_4(%arg0: i32, %arg1: i32) -> (i32, i32) {
    %c0_i32 = arith.constant 0 : i32
    %c0_i32_0 = arith.constant 0 : i32
    %c0_i32_1 = arith.constant 0 : i32
    return %c0_i32, %c0_i32_0 : i32, i32
  }
  func.func @transform_5(%arg0: i32, %arg1: i32) -> (i32, i32) {
    %c0_i32 = arith.constant 0 : i32
    %c0_i32_0 = arith.constant 0 : i32
    return %arg0, %c0_i32 : i32, i32
  }
}

module attributes {stable_mosaic.version = 11 : i64} {
  func.func @discriminator_kernel(%arg0: i32, %arg1: i32, %arg2: memref<2x8xi32, #tpu.memory_space<vmem>>, %arg3: memref<2x1xf32, #tpu.memory_space<vmem>>, %arg4: memref<2x8x32xbf16, #tpu.memory_space<vmem>>, %arg5: memref<32x128xf32, #tpu.memory_space<vmem>>, %arg6: memref<1x128xf32, #tpu.memory_space<vmem>>, %arg7: memref<2x128xf32, #tpu.memory_space<vmem>>, %arg8: memref<2x32xf32, #tpu.memory_space<vmem>>) attributes {dimension_semantics = [#tpu.dimension_semantics<parallel>, #tpu.dimension_semantics<arbitrary>], iteration_bounds = array<i64: 1, 1>, scalar_prefetch = 0 : i64, scratch_operands = 1 : i64, tpu.core_type = #tpu.core_type<tc>, window_params = [{transform_indices = @transform_0, window_bounds = array<i64: 2, 8>}, {transform_indices = @transform_1, window_bounds = array<i64: 2, 1>}, {transform_indices = @transform_2, window_bounds = array<i64: 2, 8, 32>}, {pipeline_mode = #tpu.pipeline_mode<synchronous>, transform_indices = @transform_3, window_bounds = array<i64: 32, 128>}, {pipeline_mode = #tpu.pipeline_mode<synchronous>, transform_indices = @transform_4, window_bounds = array<i64: 1, 128>}, {transform_indices = @transform_5, window_bounds = array<i64: 2, 128>}]} {
    %c0_i32 = arith.constant 0 : i32
    %0 = arith.cmpi eq, %arg1, %c0_i32 : i32
    %1 = arith.extui %0 : i1 to i32
    %c0_i32_0 = arith.constant 0 : i32
    %2 = arith.cmpi ne, %1, %c0_i32_0 : i32
    scf.if %2 {
      %cst_12 = arith.constant 0.000000e+00 : f32
      %19 = vector.broadcast %cst_12 : f32 to vector<2x32xf32>
      %c0_13 = arith.constant 0 : index
      %c0_14 = arith.constant 0 : index
      %20 = vector.load %arg8[%c0_13, %c0_14] : memref<2x32xf32, #tpu.memory_space<vmem>>, vector<2x32xf32>
      tpu.vector_store %arg8[%c0_13, %c0_14], %19 {strides = array<i32>} : memref<2x32xf32, #tpu.memory_space<vmem>>, vector<2x32xf32>,
    } else {
    }
    %c0 = arith.constant 0 : index
    %c0_1 = arith.constant 0 : index
    %3 = vector.load %arg2[%c0, %c0_1] : memref<2x8xi32, #tpu.memory_space<vmem>>, vector<2x8xi32>
    %c0_i32_2 = arith.constant 0 : i32
    %4 = vector.broadcast %c0_i32_2 : i32 to vector<2x8xi32>
    %5 = arith.cmpi ne, %3, %4 : vector<2x8xi32>
    %6 = arith.extui %5 : vector<2x8xi1> to vector<2x8xi32>
    %7 = arith.sitofp %6 : vector<2x8xi32> to vector<2x8xf32>
    %8 = arith.truncf %7 : vector<2x8xf32> to vector<2x8xbf16>
    %9 = vector.shape_cast %8 : vector<2x8xbf16> to vector<2x1x8xbf16>
    %c0_3 = arith.constant 0 : index
    %c0_4 = arith.constant 0 : index
    %c0_5 = arith.constant 0 : index
    %10 = vector.load %arg4[%c0_3, %c0_4, %c0_5] : memref<2x8x32xbf16, #tpu.memory_space<vmem>>, vector<2x8x32xbf16>
    "tpu.trace_start"() <{level = 10 : i32, message = "bqs,bsh->bqh"}> : () -> ()
    %cst = arith.constant dense<0.000000e+00> : vector<2x1x32xf32>
    %11 = tpu.matmul %9, %10, %cst {dimension_numbers = #tpu.dot_dimension_numbers<[2], [1], [1], [2], [0, 0, 0, 1, 1, 2], [0], [0]>} : vector<2x1x8xbf16>, vector<2x8x32xbf16>, vector<2x1x32xf32> -> vector<2x1x32xf32>
    "tpu.trace_stop"() : () -> ()
    %c0_6 = arith.constant 0 : index
    %c0_7 = arith.constant 0 : index
    %12 = vector.load %arg8[%c0_6, %c0_7] : memref<2x32xf32, #tpu.memory_space<vmem>>, vector<2x32xf32>
    %13 = vector.shape_cast %11 : vector<2x1x32xf32> to vector<2x32xf32>
    %14 = arith.addf %12, %13 : vector<2x32xf32>
    %c0_8 = arith.constant 0 : index
    %c0_9 = arith.constant 0 : index
    %15 = vector.load %arg8[%c0_8, %c0_9] : memref<2x32xf32, #tpu.memory_space<vmem>>, vector<2x32xf32>
    tpu.vector_store %arg8[%c0_8, %c0_9], %14 {strides = array<i32>} : memref<2x32xf32, #tpu.memory_space<vmem>>, vector<2x32xf32>,
    %c0_i32_10 = arith.constant 0 : i32
    %16 = arith.cmpi eq, %arg1, %c0_i32_10 : i32
    %17 = arith.extui %16 : i1 to i32
    %c0_i32_11 = arith.constant 0 : i32
    %18 = arith.cmpi ne, %17, %c0_i32_11 : i32
    scf.if %18 {
      %c0_12 = arith.constant 0 : index
      %c0_13 = arith.constant 0 : index
      %19 = vector.load %arg8[%c0_12, %c0_13] : memref<2x32xf32, #tpu.memory_space<vmem>>, vector<2x32xf32>
      %c0_14 = arith.constant 0 : index
      %c0_15 = arith.constant 0 : index
      %20 = vector.load %arg3[%c0_14, %c0_15] : memref<2x1xf32, #tpu.memory_space<vmem>>, vector<2x1xf32>
      %cst_16 = arith.constant 1.000000e-10 : f32
      %21 = vector.broadcast %cst_16 : f32 to vector<2x1xf32>
      %22 = arith.addf %20, %21 : vector<2x1xf32>
      %23 = vector.broadcast %22 : vector<2x1xf32> to vector<2x32xf32>
      %24 = arith.divf %19, %23 : vector<2x32xf32>
      %c0_17 = arith.constant 0 : index
      %c0_18 = arith.constant 0 : index
      %25 = vector.load %arg5[%c0_17, %c0_18] : memref<32x128xf32, #tpu.memory_space<vmem>>, vector<32x128xf32>
      %cst_19 = arith.constant dense<0.000000e+00> : vector<2x128xf32>
      %26 = tpu.matmul %24, %25, %cst_19 {dimension_numbers = #tpu.dot_dimension_numbers<[1], [0], [0], [1], [0, 0, 1, 1], [], []>} : vector<2x32xf32>, vector<32x128xf32>, vector<2x128xf32> -> vector<2x128xf32>
      %c0_20 = arith.constant 0 : index
      %c0_21 = arith.constant 0 : index
      %27 = vector.load %arg6[%c0_20, %c0_21] : memref<1x128xf32, #tpu.memory_space<vmem>>, vector<1x128xf32>
      %28 = vector.broadcast %27 : vector<1x128xf32> to vector<2x128xf32>
      %29 = arith.addf %26, %28 : vector<2x128xf32>
      %c0_22 = arith.constant 0 : index
      %c0_23 = arith.constant 0 : index
      %30 = vector.load %arg7[%c0_22, %c0_23] : memref<2x128xf32, #tpu.memory_space<vmem>>, vector<2x128xf32>
      tpu.vector_store %arg7[%c0_22, %c0_23], %29 {strides = array<i32>} : memref<2x128xf32, #tpu.memory_space<vmem>>, vector<2x128xf32>,
    } else {
    }
    return
  }
  func.func @transform_0(%arg0: i32, %arg1: i32) -> (i32, i32) {
    %c0_i32 = arith.constant 0 : i32
    return %arg0, %arg1 : i32, i32
  }
  func.func @transform_1(%arg0: i32, %arg1: i32) -> (i32, i32) {
    %c0_i32 = arith.constant 0 : i32
    %c0_i32_0 = arith.constant 0 : i32
    return %arg0, %c0_i32 : i32, i32
  }
  func.func @transform_2(%arg0: i32, %arg1: i32) -> (i32, i32, i32) {
    %c0_i32 = arith.constant 0 : i32
    %c0_i32_0 = arith.constant 0 : i32
    return %arg0, %arg1, %c0_i32 : i32, i32, i32
  }
  func.func @transform_3(%arg0: i32, %arg1: i32) -> (i32, i32) {
    %c0_i32 = arith.constant 0 : i32
    %c0_i32_0 = arith.constant 0 : i32
    %c0_i32_1 = arith.constant 0 : i32
    return %c0_i32, %c0_i32_0 : i32, i32
  }
  func.func @transform_4(%arg0: i32, %arg1: i32) -> (i32, i32) {
    %c0_i32 = arith.constant 0 : i32
    %c0_i32_0 = arith.constant 0 : i32
    %c0_i32_1 = arith.constant 0 : i32
    return %c0_i32, %c0_i32_0 : i32, i32
  }
  func.func @transform_5(%arg0: i32, %arg1: i32) -> (i32, i32) {
    %c0_i32 = arith.constant 0 : i32
    %c0_i32_0 = arith.constant 0 : i32
    return %arg0, %c0_i32 : i32, i32
  }
}

</mosaic_0001>

<bundles_post_ra>
// kernel: tpu_custom_call.1
= control target key start
LH: loop header
LB: loop body
LE: loop exit
PB: predicated region body
PF: predicated region fallthrough
CT: control target
= control target key end

     0   :  { %10 = vsyncpa [#allocation4], 0  ;;  %s682_s0 = inlined_call_operand.hbm [shape: s32[2,8], index: 0, kind: input, shape index: {}]   ;;  %s683_s1 = inlined_call_operand.hbm [shape: f32[2,1], index: 1, kind: input, shape index: {}]   ;;  %s684_s2 = inlined_call_operand.hbm [shape: bf16[2,8,32], index: 2, kind: input, shape index: {}]   ;;  %s685_s3 = inlined_call_operand.hbm [shape: f32[32,128], index: 3, kind: input, shape index: {}]   ;;  %s686_s4 = inlined_call_operand.hbm [shape: f32[1,128], index: 4, kind: input, shape index: {}]   ;;  %s687_s5 = inlined_call_operand.hbm [shape: f32[2,128], index: 5, kind: output, shape index: {}]  }
   0x1   :  { %11 = vsyncpa [#allocation7], 0 }
   0x2   :  { %12 = vsyncpa [#allocation10], 0 }
   0x3   :  { %13 = vsyncpa [#allocation5], 0  ;;  %s546_s18 = smov [#allocation6]   ;;  %s547_s20 = smov [#allocation9]  }
   0x4   :  { %s30_s19 = sshll.u32 %s546_s18, 4  ;;  %s51_s21 = sshll.u32 %s547_s20, 4  ;;  %s31_s19 = int_to_ptr.vmem [resolvable:$true] %s30_s19  ;;  %s591_s21 = int_to_ptr.vmem [resolvable:$true] %s51_s21 }
   0x5   :  { %s406_s24 = scalar_lea.hbm %s683_s1, 32 }
   0x6   :  { %p407_p0 = scmp.ne.s32.totalorder %s683_s1, %s406_s24  ;;  %p410_p1 = scmp.lt.u32.totalorder %s406_s24, %s683_s1 }
   0x8   :  { %p412_p2 = pnand %p410_p1, %p407_p0 }
   0xa   :  { %415 = shalt.err (!%p412_p2)
}
   0xb   :  { %s416_s29 = scalar_lea.vmem %s31_s19, 32  ;;  %p421_p4 = scmp.lt.s32.totalorder %s31_s19, %s31_s19 }
   0xc   :  { %p417_p3 = scmp.ne.s32.totalorder %s31_s19, %s416_s29  ;;  %p422_p5 = scmp.lt.s32.totalorder %s416_s29, %s416_s29 }
   0xe   :  { %p423_p6 = por %p422_p5, %p421_p4 }
  0x10   :  { %p424_p7 = pnand %p423_p6, %p417_p3 }
  0x12   :  { %427 = shalt.err (!%p424_p7)
}
  0x13   :  { %33 = dma.hbm_to_vmem [thread:$0]  %s683_s1, 32, %s31_s19, [#allocation7]  }
  0x14   :  { %s428_s9 = scalar_lea.hbm %s685_s3, 512 }
  0x15   :  { %p429_p8 = scmp.ne.s32.totalorder %s685_s3, %s428_s9  ;;  %p432_p9 = scmp.lt.u32.totalorder %s428_s9, %s685_s3 }
  0x17   :  { %p434_p10 = pnand %p432_p9, %p429_p8 }
  0x19   :  { %437 = shalt.err (!%p434_p10)
}
  0x1a   :  { %s438_s14 = scalar_lea.vmem %s591_s21, 512  ;;  %p443_p12 = scmp.lt.s32.totalorder %s591_s21, %s591_s21 }
  0x1b   :  { %p439_p11 = scmp.ne.s32.totalorder %s591_s21, %s438_s14  ;;  %p444_p13 = scmp.lt.s32.totalorder %s438_s14, %s438_s14 }
  0x1d   :  { %p445_p0 = por %p444_p13, %p443_p12 }
  0x1f   :  { %p446_p1 = pnand %p445_p0, %p439_p11 }
  0x21   :  { %449 = shalt.err (!%p446_p1)
}
  0x22   :  { %s548_s1 = smov 128   ;;  %s549_s15 = smov 8  }
  0x23   :  { %57 = dma.hbm_to_vmem [thread:$0]  %s685_s3, 512, %s591_s21, [#allocation10], %s548_s1, %s548_s1, %s549_s15  }
  0x24   :  { %s550_s18 = smov [#allocation3]   ;;  %s551_s20 = smov [#allocation8]  }
  0x25   :  { %s20_s19 = sshll.u32 %s550_s18, 4  ;;  %s39_s22 = sshll.u32 %s551_s20, 4  ;;  %s21_s19 = int_to_ptr.vmem [resolvable:$true] %s20_s19  ;;  %s622_s22 = int_to_ptr.vmem [resolvable:$true] %s39_s22 }
  0x26   :  { %s450_s25 = scalar_lea.hbm %s682_s0, 32 }
  0x27   :  { %p451_p2 = scmp.ne.s32.totalorder %s682_s0, %s450_s25  ;;  %p454_p3 = scmp.lt.u32.totalorder %s450_s25, %s682_s0 }
  0x29   :  { %p456_p4 = pnand %p454_p3, %p451_p2 }
  0x2b   :  { %459 = shalt.err (!%p456_p4)
}
  0x2c   :  { %s460_s3 = scalar_lea.vmem %s21_s19, 32  ;;  %p465_p6 = scmp.lt.s32.totalorder %s21_s19, %s21_s19 }
  0x2d   :  { %p461_p5 = scmp.ne.s32.totalorder %s21_s19, %s460_s3  ;;  %p466_p7 = scmp.lt.s32.totalorder %s460_s3, %s460_s3 }
  0x2f   :  { %p467_p8 = por %p466_p7, %p465_p6 }
  0x31   :  { %p468_p9 = pnand %p467_p8, %p461_p5 }
  0x33   :  { %471 = shalt.err (!%p468_p9)
}
  0x34   :  { %23 = dma.hbm_to_vmem [thread:$0]  %s682_s0, 32, %s21_s19, [#allocation4]  }
  0x35   :  { %s472_s8 = scalar_lea.hbm %s684_s2, 128 }
  0x36   :  { %p473_p10 = scmp.ne.s32.totalorder %s684_s2, %s472_s8  ;;  %p476_p11 = scmp.lt.u32.totalorder %s472_s8, %s684_s2 }
  0x38   :  { %p478_p12 = pnand %p476_p11, %p473_p10 }
  0x3a   :  { %481 = shalt.err (!%p478_p12)
}
  0x3b   :  { %s482_s13 = scalar_lea.vmem %s622_s22, 128  ;;  %p487_p0 = scmp.lt.s32.totalorder %s622_s22, %s622_s22 }
  0x3c   :  { %p483_p13 = scmp.ne.s32.totalorder %s622_s22, %s482_s13  ;;  %p488_p1 = scmp.lt.s32.totalorder %s482_s13, %s482_s13 }
  0x3e   :  { %p489_p2 = por %p488_p1, %p487_p0 }
  0x40   :  { %p490_p3 = pnand %p489_p2, %p483_p13 }
  0x42   :  { %493 = shalt.err (!%p490_p3)
}
  0x43   :  { %s552_s0 = smov 64   ;;  %s553_s14 = smov 4  }
  0x44   :  { %45 = dma.hbm_to_vmem [thread:$0]  %s684_s2, 128, %s622_s22, [#allocation7], %s552_s0, %s552_s0, %s553_s14  }
  0x45   :  { %s554_s16 = smov [#allocation11]   ;;  %s494_s20 = scalar_lea.hbm %s686_s4, 16 }
  0x46   :  { %s64_s17 = sshll.u32 %s554_s16, 4  ;;  %p495_p4 = scmp.ne.s32.totalorder %s686_s4, %s494_s20  ;;  %s65_s17 = int_to_ptr.vmem [resolvable:$true] %s64_s17 }
  0x47   :  { %p498_p5 = scmp.lt.u32.totalorder %s494_s20, %s686_s4 }
  0x49   :  { %p500_p6 = pnand %p498_p5, %p495_p4 }
  0x4b   :  { %503 = shalt.err (!%p500_p6)
}
  0x4c   :  { %s504_s27 = scalar_lea.vmem %s65_s17, 16  ;;  %s508_s2 = scalar_lea.vmem %s65_s17, 32 }
  0x4d   :  { %p505_p7 = scmp.ne.s32.totalorder %s65_s17, %s504_s27  ;;  %p509_p8 = scmp.lt.s32.totalorder %s65_s17, %s65_s17 }
  0x4e   :  { %p510_p9 = scmp.lt.s32.totalorder %s508_s2, %s504_s27 }
  0x50   :  { %p511_p10 = por %p510_p9, %p509_p8 }
  0x52   :  { %p512_p11 = pnand %p511_p10, %p505_p7 }
  0x54   :  { %515 = shalt.err (!%p512_p11)
}
  0x55   :  { %67 = dma.hbm_to_vmem [thread:$0]  %s686_s4, 16, %s65_s17, [#allocation10]  }
  0x56   :  { %538 = dma.done.wait [#allocation4], 32  }
  0x57   :  { %539 = vsyncadd [#allocation4], 4294967264 }
  0x58   :  { %540 = dma.done.wait [#allocation7], 160  }
  0x59   :  { %541 = vsyncadd [#allocation7], 4294967136 }
  0x5a   :  { %542 = dma.done.wait [#allocation10], 528  }
  0x5b   :  { %543 = vsyncadd [#allocation10], 4294966768  ;;  %v99_v0 = vlaneseq  ;;  %v555_v1 = vmov 0.0   ;;  %vm556_vm0 = vmmov 0   ;;  %v557_v2 = vmov 1966171168  }
  0x5c   :  { %359 = vmatprep.subr.bf16.mxu0 %v555_v1  ;;  %365 = vmatprep.subr.bf16.mxu1 %v555_v1  ;;  %v97_v3 = vunpack.c.l.s4 %v557_v2  ;;  %v558_v4 = vmov 0   ;;  %vm123_vm1 = vcmask 1043456   ;;  %v112_v7 = vld [vmem:[#allocation8] sm:$0xf]  ;;  %v113_v8 = vld [vmem:[#allocation8 + $0x4] sm:$0xf] }
  0x5d   :  { %361 = vmatprep.mubr.msk.bf16.mxu0 %vm556_vm0, %v555_v1  ;;  %367 = vmatprep.mubr.msk.bf16.mxu1 %vm556_vm0, %v555_v1  ;;  %v100_v6 = vshrl.u32 %v99_v0, 7  ;;  %v90_v9 = vld [vmem:[#allocation3] sm:$0x3]  ;;  %v125_v10 = vsel %vm123_vm1, %v112_v7, 0  ;;  %v176_v11 = vsel %vm123_vm1, %v113_v8, 0  ;;  %vm119_vm3 = vcmask 64512  }
  0x5e   :  { %403 = vset.pattern.permute.xlu0 %v558_v4  ;;  %v98_v5 = vunpack.c.0.s8 %v97_v3  ;;  %vm91_vm2 = vcmp.ne.s32.totalorder %v90_v9, 0  ;;  %v232_v13 = vld [vmem:[#allocation6] sm:$0x3]  ;;  %360 = vmatpush3.bf16.msra.mxu0 %v125_v10  ;;  %vm88_vm4 = vcmask 254976   ;;  %v241_v25 = vld [vmem:[#allocation9] sm:$0xff]  ;;  %v242_v26 = vld [vmem:[#allocation9 + $0x8] sm:$0xff] }
  0x5f   :  { %366 = vmatpush3.bf16.msra.mxu1 %v176_v11  ;;  %v344_v14 = vsel %vm91_vm2, 1.0, %v555_v1  ;;  %v233_v15 = vadd.f32 1e-10, %v232_v13  ;;  %v117_v19 = vsub.s32 0, %v100_v6  ;;  %89 = vst.msk [vmem:[#allocation2] sm:$0x3] %vm88_vm4, %v555_v1  ;;  %v383_v27 = vpack.c.bf16 %v242_v26, %v241_v25 }
  0x60   :  { %v101_v12 = vsub.s32 %v98_v5, %v100_v6  ;;  %v94_v16 = vpack.c.bf16 %v344_v14, %v344_v14  ;;  %v559_v28 = vmov 0.0|0.0   ;;  %v243_v29 = vld [vmem:[#allocation9 + $0x10] sm:$0xff]  ;;  %v244_v30 = vld [vmem:[#allocation9 + $0x18] sm:$0xff]  ;;  %vm222_vm5 = vcmask 1041409   ;;  %v348_v48 = vld [vmem:[#allocation11] ss:$0 sm:$0xff] }
  0x61   :  { %236 = vperm.xlu0 %403, %v233_v15   ;;  %382 = vmatprep.subr.bf16.mxu0 %v559_v28  ;;  %v386_v31 = vpack.c.bf16 %v244_v30, %v243_v29  ;;  %vm252_vm6 = vcmask 261120   ;;  %s560_s4 = smov [#allocation12]  }
  0x62   :  { %v102_v17 = vrot.slane %v94_v16, %v101_v12  ;;  %s333_s29 = sshll.u32 %s560_s4, 4  ;;  %s334_s29 = int_to_ptr.vmem [resolvable:$true] %s333_s29 }
  0x63   :  { %s516_s3 = scalar_lea.vmem %s334_s29, 32  ;;  %p521_p13 = scmp.lt.s32.totalorder %s334_s29, %s334_s29 }
  0x64   :  { %v109_v18 = vrot.slane %v102_v17, %v101_v12  ;;  %p517_p12 = scmp.ne.s32.totalorder %s334_s29, %s516_s3  ;;  %p522_p0 = scmp.lt.s32.totalorder %s516_s3, %s516_s3 }
  0x66   :  { %v345_v20 = vpack.i.b16 %v109_v18, %v109_v18  ;;  %v111_v21 = vunpack.i.h.s16 %v109_v18  ;;  %v218_v37 = vld [vmem:[#allocation2] sm:$0x3]  ;;  %p523_p1 = por %p522_p0, %p521_p13 }
  0x68   :  { %v118_v22 = vrot.slane %v345_v20, %v117_v19  ;;  %v167_v23 = vpack.i.b16 %v111_v21, %v111_v21  ;;  %p524_p2 = pnand %p523_p1, %p517_p12 }
  0x6a   :  { %362 = vmatmul.mubr.msk.bf16.vlgmr.msra.gmra.mrb[0].mxu0 %vm119_vm3, %v118_v22  ;;  %v171_v24 = vrot.slane %v167_v23, %v117_v19 }
  0x6b   :  { %379 = vmatprep.mubr.msk.f32.mxu0 %vm556_vm0, %v555_v1  ;;  %384 = vmatpush3.bf16.msra.mxu0 %v383_v27 }
  0x6c   :  { %368 = vmatmul.mubr.msk.bf16.vlgmr.msra.gmra.mrb[0].mxu1 %vm119_vm3, %v171_v24  ;;  %385 = vmatprep.subr.bf16.mxu0 %v559_v28 }
  0x6f   :  { %387 = vmatpush3.bf16.msra.mxu0 %v386_v31 }
  0xe0   :  { %v237_v33 = vpop.permute.xlu0 %236 }
  0xe1   :  { %404 = vrcp.f32 %v237_v33 }
  0xeb   :  { %v405_v45 = vpop.eup %404 }
 0x13d   :  { %v161_v32 = vpop.f32.mrb[0].mxu0 }
 0x13e   :  { %v363_v34 = vpop.f32.mrb[1].mxu0 }
 0x13f   :  { %v212_v35 = vpop.f32.mrb[0].mxu1  ;;  %v164_v36 = vpop.f32.mrb[2].mxu0 }
 0x140   :  { %v221_v38 = vrot.slane %v212_v35, 7  ;;  %v369_v39 = vpop.f32.mrb[1].mxu1  ;;  %v364_v40 = vpop.f32.mrb[3].mxu0 }
 0x141   :  { %v215_v41 = vpop.f32.mrb[2].mxu1 }
 0x142   :  { %v223_v42 = vsel %vm222_vm5, %v221_v38, %v161_v32  ;;  %v370_v43 = vpop.f32.mrb[3].mxu1 }
 0x143   :  { %v225_v44 = vadd.f32 %v223_v42, %v218_v37 }
 0x145   :  { %227 = vst.msk [vmem:[#allocation2] sm:$0x3] %vm88_vm4, %v225_v44 }
 0x14c   :  { %v231_v46 = vld [vmem:[#allocation2] sm:$0x3] }
 0x14d   :  { %v240_v47 = vmul.f32 %v405_v45, %v231_v46 }
 0x14f   :  { %380 = vmatmul.mubr.msk.f32.vlgmr.msra.gmra.mrb[4].mxu0 %vm252_vm6, %v240_v47 }
 0x222   :  { %v322_v49 = vpop.f32.mrb[4].mxu0 }
 0x223   :  { %v323_v50 = vadd.f32 %v348_v48, %v322_v49  ;;  %v381_v51 = vpop.f32.mrb[5].mxu0 }
 0x225   :  { %326 = vst [vmem:[#allocation12] sm:$0x3] %v323_v50 }
 0x226   :  { %527 = shalt.err (!%p524_p2)
}
 0x227   :  { %s528_s6 = scalar_lea.hbm %s687_s5, 32 }
 0x228   :  { %p529_p3 = scmp.ne.s32.totalorder %s687_s5, %s528_s6  ;;  %p532_p4 = scmp.lt.u32.totalorder %s528_s6, %s687_s5 }
 0x22a   :  { %p534_p5 = pnand %p532_p4, %p529_p3 }
 0x22c   :  { %537 = shalt.err (!%p534_p5)
}
 0x22d   :  { %336 = dma.vmem_to_hbm [thread:$0]  %s334_s29, 32, %s687_s5, [#allocation5]  }
 0x22e   :  { %544 = dma.done.wait [#allocation5], 32  }
 0x22f   :  { %545 = vsyncadd [#allocation5], 4294967264 }
 0x230   :  { %340 = vsyncpa [#allocation4], 1 }
 0x231   :  { %341 = vsyncpa [#allocation7], 1 }
 0x232   :  { %342 = vsyncpa [#allocation10], 1 }
 0x233   :  { %343 = vsyncpa [#allocation5], 1 }

// kernel: tpu_custom_call.1
= control target key start
LH: loop header
LB: loop body
LE: loop exit
PB: predicated region body
PF: predicated region fallthrough
CT: control target
= control target key end

     0   :  { %10 = vsyncpa [#allocation4], 0  ;;  %s682_s0 = inlined_call_operand.hbm [shape: s32[2,8], index: 0, kind: input, shape index: {}]   ;;  %s683_s1 = inlined_call_operand.hbm [shape: f32[2,1], index: 1, kind: input, shape index: {}]   ;;  %s684_s2 = inlined_call_operand.hbm [shape: bf16[2,8,32], index: 2, kind: input, shape index: {}]   ;;  %s685_s3 = inlined_call_operand.hbm [shape: f32[32,128], index: 3, kind: input, shape index: {}]   ;;  %s686_s4 = inlined_call_operand.hbm [shape: f32[1,128], index: 4, kind: input, shape index: {}]   ;;  %s687_s5 = inlined_call_operand.hbm [shape: f32[2,128], index: 5, kind: output, shape index: {}]  }
   0x1   :  { %11 = vsyncpa [#allocation7], 0 }
   0x2   :  { %12 = vsyncpa [#allocation10], 0 }
   0x3   :  { %13 = vsyncpa [#allocation5], 0  ;;  %s546_s18 = smov [#allocation6]   ;;  %s547_s20 = smov [#allocation9]  }
   0x4   :  { %s30_s19 = sshll.u32 %s546_s18, 4  ;;  %s51_s21 = sshll.u32 %s547_s20, 4  ;;  %s31_s19 = int_to_ptr.vmem [resolvable:$true] %s30_s19  ;;  %s591_s21 = int_to_ptr.vmem [resolvable:$true] %s51_s21 }
   0x5   :  { %s406_s24 = scalar_lea.hbm %s683_s1, 32 }
   0x6   :  { %p407_p0 = scmp.ne.s32.totalorder %s683_s1, %s406_s24  ;;  %p410_p1 = scmp.lt.u32.totalorder %s406_s24, %s683_s1 }
   0x8   :  { %p412_p2 = pnand %p410_p1, %p407_p0 }
   0xa   :  { %415 = shalt.err (!%p412_p2)
}
   0xb   :  { %s416_s29 = scalar_lea.vmem %s31_s19, 32  ;;  %p421_p4 = scmp.lt.s32.totalorder %s31_s19, %s31_s19 }
   0xc   :  { %p417_p3 = scmp.ne.s32.totalorder %s31_s19, %s416_s29  ;;  %p422_p5 = scmp.lt.s32.totalorder %s416_s29, %s416_s29 }
   0xe   :  { %p423_p6 = por %p422_p5, %p421_p4 }
  0x10   :  { %p424_p7 = pnand %p423_p6, %p417_p3 }
  0x12   :  { %427 = shalt.err (!%p424_p7)
}
  0x13   :  { %33 = dma.hbm_to_vmem [thread:$0]  %s683_s1, 32, %s31_s19, [#allocation7]  }
  0x14   :  { %s428_s9 = scalar_lea.hbm %s685_s3, 512 }
  0x15   :  { %p429_p8 = scmp.ne.s32.totalorder %s685_s3, %s428_s9  ;;  %p432_p9 = scmp.lt.u32.totalorder %s428_s9, %s685_s3 }
  0x17   :  { %p434_p10 = pnand %p432_p9, %p429_p8 }
  0x19   :  { %437 = shalt.err (!%p434_p10)
}
  0x1a   :  { %s438_s14 = scalar_lea.vmem %s591_s21, 512  ;;  %p443_p12 = scmp.lt.s32.totalorder %s591_s21, %s591_s21 }
  0x1b   :  { %p439_p11 = scmp.ne.s32.totalorder %s591_s21, %s438_s14  ;;  %p444_p13 = scmp.lt.s32.totalorder %s438_s14, %s438_s14 }
  0x1d   :  { %p445_p0 = por %p444_p13, %p443_p12 }
  0x1f   :  { %p446_p1 = pnand %p445_p0, %p439_p11 }
  0x21   :  { %449 = shalt.err (!%p446_p1)
}
  0x22   :  { %s548_s1 = smov 128   ;;  %s549_s15 = smov 8  }
  0x23   :  { %57 = dma.hbm_to_vmem [thread:$0]  %s685_s3, 512, %s591_s21, [#allocation10], %s548_s1, %s548_s1, %s549_s15  }
  0x24   :  { %s550_s18 = smov [#allocation3]   ;;  %s551_s20 = smov [#allocation8]  }
  0x25   :  { %s20_s19 = sshll.u32 %s550_s18, 4  ;;  %s39_s22 = sshll.u32 %s551_s20, 4  ;;  %s21_s19 = int_to_ptr.vmem [resolvable:$true] %s20_s19  ;;  %s622_s22 = int_to_ptr.vmem [resolvable:$true] %s39_s22 }
  0x26   :  { %s450_s25 = scalar_lea.hbm %s682_s0, 32 }
  0x27   :  { %p451_p2 = scmp.ne.s32.totalorder %s682_s0, %s450_s25  ;;  %p454_p3 = scmp.lt.u32.totalorder %s450_s25, %s682_s0 }
  0x29   :  { %p456_p4 = pnand %p454_p3, %p451_p2 }
  0x2b   :  { %459 = shalt.err (!%p456_p4)
}
  0x2c   :  { %s460_s3 = scalar_lea.vmem %s21_s19, 32  ;;  %p465_p6 = scmp.lt.s32.totalorder %s21_s19, %s21_s19 }
  0x2d   :  { %p461_p5 = scmp.ne.s32.totalorder %s21_s19, %s460_s3  ;;  %p466_p7 = scmp.lt.s32.totalorder %s460_s3, %s460_s3 }
  0x2f   :  { %p467_p8 = por %p466_p7, %p465_p6 }
  0x31   :  { %p468_p9 = pnand %p467_p8, %p461_p5 }
  0x33   :  { %471 = shalt.err (!%p468_p9)
}
  0x34   :  { %23 = dma.hbm_to_vmem [thread:$0]  %s682_s0, 32, %s21_s19, [#allocation4]  }
  0x35   :  { %s472_s8 = scalar_lea.hbm %s684_s2, 128 }
  0x36   :  { %p473_p10 = scmp.ne.s32.totalorder %s684_s2, %s472_s8  ;;  %p476_p11 = scmp.lt.u32.totalorder %s472_s8, %s684_s2 }
  0x38   :  { %p478_p12 = pnand %p476_p11, %p473_p10 }
  0x3a   :  { %481 = shalt.err (!%p478_p12)
}
  0x3b   :  { %s482_s13 = scalar_lea.vmem %s622_s22, 128  ;;  %p487_p0 = scmp.lt.s32.totalorder %s622_s22, %s622_s22 }
  0x3c   :  { %p483_p13 = scmp.ne.s32.totalorder %s622_s22, %s482_s13  ;;  %p488_p1 = scmp.lt.s32.totalorder %s482_s13, %s482_s13 }
  0x3e   :  { %p489_p2 = por %p488_p1, %p487_p0 }
  0x40   :  { %p490_p3 = pnand %p489_p2, %p483_p13 }
  0x42   :  { %493 = shalt.err (!%p490_p3)
}
  0x43   :  { %s552_s0 = smov 64   ;;  %s553_s14 = smov 4  }
  0x44   :  { %45 = dma.hbm_to_vmem [thread:$0]  %s684_s2, 128, %s622_s22, [#allocation7], %s552_s0, %s552_s0, %s553_s14  }
  0x45   :  { %s554_s16 = smov [#allocation11]   ;;  %s494_s20 = scalar_lea.hbm %s686_s4, 16 }
  0x46   :  { %s64_s17 = sshll.u32 %s554_s16, 4  ;;  %p495_p4 = scmp.ne.s32.totalorder %s686_s4, %s494_s20  ;;  %s65_s17 = int_to_ptr.vmem [resolvable:$true] %s64_s17 }
  0x47   :  { %p498_p5 = scmp.lt.u32.totalorder %s494_s20, %s686_s4 }
  0x49   :  { %p500_p6 = pnand %p498_p5, %p495_p4 }
  0x4b   :  { %503 = shalt.err (!%p500_p6)
}
  0x4c   :  { %s504_s27 = scalar_lea.vmem %s65_s17, 16  ;;  %s508_s2 = scalar_lea.vmem %s65_s17, 32 }
  0x4d   :  { %p505_p7 = scmp.ne.s32.totalorder %s65_s17, %s504_s27  ;;  %p509_p8 = scmp.lt.s32.totalorder %s65_s17, %s65_s17 }
  0x4e   :  { %p510_p9 = scmp.lt.s32.totalorder %s508_s2, %s504_s27 }
  0x50   :  { %p511_p10 = por %p510_p9, %p509_p8 }
  0x52   :  { %p512_p11 = pnand %p511_p10, %p505_p7 }
  0x54   :  { %515 = shalt.err (!%p512_p11)
}
  0x55   :  { %67 = dma.hbm_to_vmem [thread:$0]  %s686_s4, 16, %s65_s17, [#allocation10]  }
  0x56   :  { %538 = dma.done.wait [#allocation4], 32  }
  0x57   :  { %539 = vsyncadd [#allocation4], 4294967264 }
  0x58   :  { %540 = dma.done.wait [#allocation7], 160  }
  0x59   :  { %541 = vsyncadd [#allocation7], 4294967136 }
  0x5a   :  { %542 = dma.done.wait [#allocation10], 528  }
  0x5b   :  { %543 = vsyncadd [#allocation10], 4294966768  ;;  %v99_v0 = vlaneseq  ;;  %v555_v1 = vmov 0.0   ;;  %vm556_vm0 = vmmov 0   ;;  %v557_v2 = vmov 1966171168  }
  0x5c   :  { %359 = vmatprep.subr.bf16.mxu0 %v555_v1  ;;  %365 = vmatprep.subr.bf16.mxu1 %v555_v1  ;;  %v97_v3 = vunpack.c.l.s4 %v557_v2  ;;  %v558_v4 = vmov 0   ;;  %vm123_vm1 = vcmask 1043456   ;;  %v112_v7 = vld [vmem:[#allocation8] sm:$0xf]  ;;  %v113_v8 = vld [vmem:[#allocation8 + $0x4] sm:$0xf] }
  0x5d   :  { %361 = vmatprep.mubr.msk.bf16.mxu0 %vm556_vm0, %v555_v1  ;;  %367 = vmatprep.mubr.msk.bf16.mxu1 %vm556_vm0, %v555_v1  ;;  %v100_v6 = vshrl.u32 %v99_v0, 7  ;;  %v90_v9 = vld [vmem:[#allocation3] sm:$0x3]  ;;  %v125_v10 = vsel %vm123_vm1, %v112_v7, 0  ;;  %v176_v11 = vsel %vm123_vm1, %v113_v8, 0  ;;  %vm119_vm3 = vcmask 64512  }
  0x5e   :  { %403 = vset.pattern.permute.xlu0 %v558_v4  ;;  %v98_v5 = vunpack.c.0.s8 %v97_v3  ;;  %vm91_vm2 = vcmp.ne.s32.totalorder %v90_v9, 0  ;;  %v232_v13 = vld [vmem:[#allocation6] sm:$0x3]  ;;  %360 = vmatpush3.bf16.msra.mxu0 %v125_v10  ;;  %vm88_vm4 = vcmask 254976   ;;  %v241_v25 = vld [vmem:[#allocation9] sm:$0xff]  ;;  %v242_v26 = vld [vmem:[#allocation9 + $0x8] sm:$0xff] }
  0x5f   :  { %366 = vmatpush3.bf16.msra.mxu1 %v176_v11  ;;  %v344_v14 = vsel %vm91_vm2, 1.0, %v555_v1  ;;  %v233_v15 = vadd.f32 1e-10, %v232_v13  ;;  %v117_v19 = vsub.s32 0, %v100_v6  ;;  %89 = vst.msk [vmem:[#allocation2] sm:$0x3] %vm88_vm4, %v555_v1  ;;  %v383_v27 = vpack.c.bf16 %v242_v26, %v241_v25 }
  0x60   :  { %v101_v12 = vsub.s32 %v98_v5, %v100_v6  ;;  %v94_v16 = vpack.c.bf16 %v344_v14, %v344_v14  ;;  %v559_v28 = vmov 0.0|0.0   ;;  %v243_v29 = vld [vmem:[#allocation9 + $0x10] sm:$0xff]  ;;  %v244_v30 = vld [vmem:[#allocation9 + $0x18] sm:$0xff]  ;;  %vm222_vm5 = vcmask 1041409   ;;  %v348_v48 = vld [vmem:[#allocation11] ss:$0 sm:$0xff] }
  0x61   :  { %236 = vperm.xlu0 %403, %v233_v15   ;;  %382 = vmatprep.subr.bf16.mxu0 %v559_v28  ;;  %v386_v31 = vpack.c.bf16 %v244_v30, %v243_v29  ;;  %vm252_vm6 = vcmask 261120   ;;  %s560_s4 = smov [#allocation12]  }
  0x62   :  { %v102_v17 = vrot.slane %v94_v16, %v101_v12  ;;  %s333_s29 = sshll.u32 %s560_s4, 4  ;;  %s334_s29 = int_to_ptr.vmem [resolvable:$true] %s333_s29 }
  0x63   :  { %s516_s3 = scalar_lea.vmem %s334_s29, 32  ;;  %p521_p13 = scmp.lt.s32.totalorder %s334_s29, %s334_s29 }
  0x64   :  { %v109_v18 = vrot.slane %v102_v17, %v101_v12  ;;  %p517_p12 = scmp.ne.s32.totalorder %s334_s29, %s516_s3  ;;  %p522_p0 = scmp.lt.s32.totalorder %s516_s3, %s516_s3 }
  0x66   :  { %v345_v20 = vpack.i.b16 %v109_v18, %v109_v18  ;;  %v111_v21 = vunpack.i.h.s16 %v109_v18  ;;  %v218_v37 = vld [vmem:[#allocation2] sm:$0x3]  ;;  %p523_p1 = por %p522_p0, %p521_p13 }
  0x68   :  { %v118_v22 = vrot.slane %v345_v20, %v117_v19  ;;  %v167_v23 = vpack.i.b16 %v111_v21, %v111_v21  ;;  %p524_p2 = pnand %p523_p1, %p517_p12 }
  0x6a   :  { %362 = vmatmul.mubr.msk.bf16.vlgmr.msra.gmra.mrb[0].mxu0 %vm119_vm3, %v118_v22  ;;  %v171_v24 = vrot.slane %v167_v23, %v117_v19 }
  0x6b   :  { %379 = vmatprep.mubr.msk.f32.mxu0 %vm556_vm0, %v555_v1  ;;  %384 = vmatpush3.bf16.msra.mxu0 %v383_v27 }
  0x6c   :  { %368 = vmatmul.mubr.msk.bf16.vlgmr.msra.gmra.mrb[0].mxu1 %vm119_vm3, %v171_v24  ;;  %385 = vmatprep.subr.bf16.mxu0 %v559_v28 }
  0x6f   :  { %387 = vmatpush3.bf16.msra.mxu0 %v386_v31 }
  0xe0   :  { %v237_v33 = vpop.permute.xlu0 %236 }
  0xe1   :  { %404 = vrcp.f32 %v237_v33 }
  0xeb   :  { %v405_v45 = vpop.eup %404 }
 0x13d   :  { %v161_v32 = vpop.f32.mrb[0].mxu0 }
 0x13e   :  { %v363_v34 = vpop.f32.mrb[1].mxu0 }
 0x13f   :  { %v212_v35 = vpop.f32.mrb[0].mxu1  ;;  %v164_v36 = vpop.f32.mrb[2].mxu0 }
 0x140   :  { %v221_v38 = vrot.slane %v212_v35, 7  ;;  %v369_v39 = vpop.f32.mrb[1].mxu1  ;;  %v364_v40 = vpop.f32.mrb[3].mxu0 }
 0x141   :  { %v215_v41 = vpop.f32.mrb[2].mxu1 }
 0x142   :  { %v223_v42 = vsel %vm222_vm5, %v221_v38, %v161_v32  ;;  %v370_v43 = vpop.f32.mrb[3].mxu1 }
 0x143   :  { %v225_v44 = vadd.f32 %v223_v42, %v218_v37 }
 0x145   :  { %227 = vst.msk [vmem:[#allocation2] sm:$0x3] %vm88_vm4, %v225_v44 }
 0x14c   :  { %v231_v46 = vld [vmem:[#allocation2] sm:$0x3] }
 0x14d   :  { %v240_v47 = vmul.f32 %v405_v45, %v231_v46 }
 0x14f   :  { %380 = vmatmul.mubr.msk.f32.vlgmr.msra.gmra.mrb[4].mxu0 %vm252_vm6, %v240_v47 }
 0x222   :  { %v322_v49 = vpop.f32.mrb[4].mxu0 }
 0x223   :  { %v323_v50 = vadd.f32 %v348_v48, %v322_v49  ;;  %v381_v51 = vpop.f32.mrb[5].mxu0 }
 0x225   :  { %326 = vst [vmem:[#allocation12] sm:$0x3] %v323_v50 }
 0x226   :  { %527 = shalt.err (!%p524_p2)
}
 0x227   :  { %s528_s6 = scalar_lea.hbm %s687_s5, 32 }
 0x228   :  { %p529_p3 = scmp.ne.s32.totalorder %s687_s5, %s528_s6  ;;  %p532_p4 = scmp.lt.u32.totalorder %s528_s6, %s687_s5 }
 0x22a   :  { %p534_p5 = pnand %p532_p4, %p529_p3 }
 0x22c   :  { %537 = shalt.err (!%p534_p5)
}
 0x22d   :  { %336 = dma.vmem_to_hbm [thread:$0]  %s334_s29, 32, %s687_s5, [#allocation5]  }
 0x22e   :  { %544 = dma.done.wait [#allocation5], 32  }
 0x22f   :  { %545 = vsyncadd [#allocation5], 4294967264 }
 0x230   :  { %340 = vsyncpa [#allocation4], 1 }
 0x231   :  { %341 = vsyncpa [#allocation7], 1 }
 0x232   :  { %342 = vsyncpa [#allocation10], 1 }
 0x233   :  { %343 = vsyncpa [#allocation5], 1 }

</bundles_post_ra>
